<compile_context>
chip_gen: v7x
topology: tpu7x:2x2x1
jax: 0.10.0
libtpu: 0.0.40
codegen_flags: <defaults>
</compile_context>

<pallas_src>
import functools

import jax
import jax.numpy as jnp
from jax.experimental import pallas as pl
from jax.experimental.pallas import tpu as pltpu


def _round_up(n, m):
    return ((n + m - 1) // m) * m


def _pick_lane_tile(hw):
    LANE = 128
    TARGET = 512  # >=512-wide lane tiles reach ~85% of the HBM roofline
    if hw > TARGET:
        return TARGET
    return _round_up(hw, LANE)


def _pick_batch_tile(B, C, thw, max_tile_bytes=4 * 1024 * 1024):
    # Largest TB dividing B such that one x block (TB*C, THW) stays within the
    # per-buffer budget (x is double-buffered by the pipeline) and the
    # BlockSpec constraints hold: (TB*C) % 8 == 0 or TB == B (input rows),
    # TB % 8 == 0 or TB == B (output rows).
    for tb in range(B, 0, -1):
        if B % tb:
            continue
        rows = tb * C
        if tb != 1 and rows * thw * 4 > max_tile_bytes:
            continue
        rows_ok = (rows % 8 == 0) or (tb == B)
        out_ok = (tb % 8 == 0) or (tb == B)
        if rows_ok and out_ok:
            return tb
    return B


def head_kernel(x_ref, w1_ref, b1_ref, w2_ref, b2_ref, sel_ref, exp_ref,
                o_ref, acc_ref, *, negative_slope, inv_hw):
    k = pl.program_id(1)

    @pl.when(k == 0)
    def _init():
        acc_ref[...] = jnp.zeros_like(acc_ref)

    # Streaming global-average-pool: one cross-lane (XLU) reduce + one VPU add
    # per tile; accumulate sums in f32, scale by 1/(H*W) only in the finalize.
    x = x_ref[...].astype(jnp.float32)                    # (TB*C, THW)
    acc_ref[...] += jnp.sum(x, axis=-1, keepdims=True)    # (TB*C, 1)

    @pl.when(k == pl.num_programs(1) - 1)
    def _finalize():
        # Un-flatten (TB*C, 1) -> (TB, C) via two tiny constant matrices
        # (no in-kernel relayout); fold in the 1/(H*W) scale here.
        spread = acc_ref[...] * exp_ref[...]              # (TB*C, C)
        pooled = jnp.dot(sel_ref[...], spread,
                         preferred_element_type=jnp.float32) * inv_hw  # (TB, C)

        # linear_1 + LeakyReLU
        h = jnp.dot(pooled, w1_ref[...],
                    preferred_element_type=jnp.float32) + b1_ref[...]
        h = jnp.where(h >= 0.0, h, negative_slope * h)

        # TODO(synk): training-mode dropout (random mask + 1/(1-p) scaling) not
        # implemented; eval-mode nn.Dropout is the identity computed here.

        # linear_2 + softmax over the class dim (exact divide: the block is
        # tiny, and exact normalization guarantees rows sum to 1).
        logits = jnp.dot(h, w2_ref[...],
                         preferred_element_type=jnp.float32) + b2_ref[...]
        m = jnp.max(logits, axis=-1, keepdims=True)
        e = jnp.exp(logits - m)
        denom = jnp.sum(e, axis=-1, keepdims=True)
        o_ref[...] = (e / denom).astype(o_ref.dtype)


def head_forward(x_nchw, w1, b1, w2, b2, negative_slope=0.01):
    """x_nchw: (B, C, H, W). w1: (C, hidden), w2: (hidden, classes) (nn.Linear
    weights stored transposed). Returns (B, num_classes) softmax probs (f32)."""
    B, C, H, W = x_nchw.shape
    hidden = w1.shape[1]
    num_classes = w2.shape[1]
    HW = H * W

    THW = _pick_lane_tile(HW)
    HW_pad = _round_up(HW, THW)
    TB = _pick_batch_tile(B, C, THW)
    rows = TB * C

    # Dense (B*C, HW_pad) slab: full sublane occupancy for the pooling reduce.
    x2d = x_nchw.reshape(B * C, HW).astype(jnp.float32)
    if HW_pad != HW:
        x2d = jnp.pad(x2d, ((0, 0), (0, HW_pad - HW)))  # zeros: sum unaffected

    w1f = w1.astype(jnp.float32)
    w2f = w2.astype(jnp.float32)
    b1_2d = b1.reshape(1, hidden).astype(jnp.float32)
    b2_2d = b2.reshape(1, num_classes).astype(jnp.float32)

    # Constant un-flatten helpers: pooled(TB,C) = sel_t @ (acc(TB*C,1) * expand_c).
    r = jnp.arange(rows)
    sel_t = (r[None, :] // C == jnp.arange(TB)[:, None]).astype(jnp.float32)   # (TB, rows)
    expand_c = (r[:, None] % C == jnp.arange(C)[None, :]).astype(jnp.float32)  # (rows, C)

    kernel = functools.partial(head_kernel,
                               negative_slope=float(negative_slope),
                               inv_hw=1.0 / float(HW))

    grid = (B // TB, HW_pad // THW)

    x_block_bytes = rows * THW * 4
    resident_bytes = 4 * (C * hidden + hidden + hidden * num_classes + num_classes
                          + TB * rows + rows * C + TB * num_classes + rows)
    # Double-buffered x tiles + resident operands, with headroom; stays well
    # under v7x's 64 MiB physical VMEM.
    vmem_limit = int(min(max(4 * x_block_bytes + 2 * resident_bytes + (4 << 20),
                             16 << 20), 48 << 20))

    cost = pl.CostEstimate(
        flops=int(B * C * HW + 2 * B * C * hidden + 2 * B * hidden * num_classes
                  + 2 * B * rows * C + 6 * B * num_classes),
        transcendentals=int(B * num_classes),
        bytes_accessed=int(x2d.size * 4 + resident_bytes + B * num_classes * 4),
    )

    return pl.pallas_call(
        kernel,
        out_shape=jax.ShapeDtypeStruct((B, num_classes), jnp.float32),
        grid_spec=pltpu.PrefetchScalarGridSpec(
            num_scalar_prefetch=0,
            grid=grid,
            in_specs=[
                pl.BlockSpec((rows, THW), lambda i, k: (i, k)),            # x tile
                pl.BlockSpec((C, hidden), lambda i, k: (0, 0)),            # w1 (resident)
                pl.BlockSpec((1, hidden), lambda i, k: (0, 0)),            # b1
                pl.BlockSpec((hidden, num_classes), lambda i, k: (0, 0)),  # w2
                pl.BlockSpec((1, num_classes), lambda i, k: (0, 0)),       # b2
                pl.BlockSpec((TB, rows), lambda i, k: (0, 0)),             # sel_t
                pl.BlockSpec((rows, C), lambda i, k: (0, 0)),              # expand_c
            ],
            out_specs=pl.BlockSpec((TB, num_classes), lambda i, k: (i, 0)),
            scratch_shapes=[pltpu.VMEM((rows, 1), jnp.float32)],
        ),
        compiler_params=pltpu.CompilerParams(
            dimension_semantics=("parallel", "arbitrary"),
            vmem_limit_bytes=vmem_limit,
        ),
        cost_estimate=cost,
    )(x2d, w1f, b1_2d, w2f, b2_2d, sel_t, expand_c)


if __name__ == "__main__":
    # Small shapes consistent with the module; HW=900 exercises the multi-step
    # reduction and the ragged last lane-tile (zero padding + exact mean divisor).
    B, C, H, W = 2, 4, 30, 30        # in_features = C = 4
    hidden_dim = 32
    num_classes = 8
    negative_slope = 0.1

    key = jax.random.PRNGKey(0)
    kx, k1, k2, k3, k4 = jax.random.split(key, 5)

    x = jax.random.normal(kx, (B, C, H, W), dtype=jnp.float32)

    # nn.Linear params (weight (out,in), bias (out,)) stored transposed to (in,out)
    w1 = jax.random.normal(k1, (C, hidden_dim), dtype=jnp.float32) * 0.1
    b1 = jax.random.normal(k2, (hidden_dim,), dtype=jnp.float32) * 0.1
    w2 = jax.random.normal(k3, (hidden_dim, num_classes), dtype=jnp.float32) * 0.1
    b2 = jax.random.normal(k4, (num_classes,), dtype=jnp.float32) * 0.1

    out = head_forward(x, w1, b1, w2, b2, negative_slope=negative_slope)
    out = jax.block_until_ready(out)

    # pure-JAX reference
    pooled = jnp.mean(x.reshape(B, C, H * W), axis=-1)
    h = pooled @ w1 + b1
    h = jnp.where(h >= 0.0, h, negative_slope * h)
    logits = h @ w2 + b2
    ref = jax.nn.softmax(logits, axis=-1)

    assert out.shape == (B, num_classes)
    assert jnp.allclose(out, ref, atol=1e-4, rtol=1e-4), "mismatch vs reference"
    assert jnp.allclose(jnp.sum(out, axis=-1), 1.0, atol=1e-5)

    print("KERNEL_OK")
</pallas_src>

<mosaic_0001>
module attributes {stable_mosaic.version = 11 : i64} {
  func.func @head_kernel(%arg0: i32, %arg1: i32, %arg2: memref<8x512xf32, #tpu.memory_space<vmem>>, %arg3: memref<4x32xf32, #tpu.memory_space<vmem>>, %arg4: memref<1x32xf32, #tpu.memory_space<vmem>>, %arg5: memref<32x8xf32, #tpu.memory_space<vmem>>, %arg6: memref<1x8xf32, #tpu.memory_space<vmem>>, %arg7: memref<2x8xf32, #tpu.memory_space<vmem>>, %arg8: memref<8x4xf32, #tpu.memory_space<vmem>>, %arg9: memref<2x8xf32, #tpu.memory_space<vmem>>, %arg10: memref<8x1xf32, #tpu.memory_space<vmem>>) attributes {dimension_semantics = [#tpu.dimension_semantics<parallel>, #tpu.dimension_semantics<arbitrary>], iteration_bounds = array<i64: 1, 2>, scalar_prefetch = 0 : i64, scratch_operands = 1 : i64, tpu.core_type = #tpu.core_type<tc>, window_params = [{transform_indices = @transform_0, window_bounds = array<i64: 8, 512>}, {pipeline_mode = #tpu.pipeline_mode<synchronous>, transform_indices = @transform_1, window_bounds = array<i64: 4, 32>}, {pipeline_mode = #tpu.pipeline_mode<synchronous>, transform_indices = @transform_2, window_bounds = array<i64: 1, 32>}, {pipeline_mode = #tpu.pipeline_mode<synchronous>, transform_indices = @transform_3, window_bounds = array<i64: 32, 8>}, {pipeline_mode = #tpu.pipeline_mode<synchronous>, transform_indices = @transform_4, window_bounds = array<i64: 1, 8>}, {pipeline_mode = #tpu.pipeline_mode<synchronous>, transform_indices = @transform_5, window_bounds = array<i64: 2, 8>}, {pipeline_mode = #tpu.pipeline_mode<synchronous>, transform_indices = @transform_6, window_bounds = array<i64: 8, 4>}, {transform_indices = @transform_7, window_bounds = array<i64: 2, 8>}]} {
    %c0_i32 = arith.constant 0 : i32
    %0 = arith.cmpi eq, %arg1, %c0_i32 : i32
    %1 = arith.extui %0 : i1 to i32
    %c0_i32_0 = arith.constant 0 : i32
    %2 = arith.cmpi ne, %1, %c0_i32_0 : i32
    scf.if %2 {
      %cst_7 = arith.constant 0.000000e+00 : f32
      %12 = vector.broadcast %cst_7 : f32 to vector<8x1xf32>
      %c0_8 = arith.constant 0 : index
      %c0_9 = arith.constant 0 : index
      %13 = vector.load %arg10[%c0_8, %c0_9] : memref<8x1xf32, #tpu.memory_space<vmem>>, vector<8x1xf32>
      tpu.vector_store %arg10[%c0_8, %c0_9], %12 {strides = array<i32>} : memref<8x1xf32, #tpu.memory_space<vmem>>, vector<8x1xf32>,
    } else {
    }
    %c0 = arith.constant 0 : index
    %c0_1 = arith.constant 0 : index
    %3 = vector.load %arg2[%c0, %c0_1] : memref<8x512xf32, #tpu.memory_space<vmem>>, vector<8x512xf32>
    %c0_2 = arith.constant 0 : index
    %c0_3 = arith.constant 0 : index
    %4 = vector.load %arg10[%c0_2, %c0_3] : memref<8x1xf32, #tpu.memory_space<vmem>>, vector<8x1xf32>
    %cst = arith.constant dense<0.000000e+00> : vector<8xf32>
    %5 = vector.multi_reduction <add>, %3, %cst [1] : vector<8x512xf32> to vector<8xf32>
    %6 = vector.shape_cast %5 : vector<8xf32> to vector<8x1xf32>
    %7 = arith.addf %4, %6 : vector<8x1xf32>
    %c0_4 = arith.constant 0 : index
    %c0_5 = arith.constant 0 : index
    %8 = vector.load %arg10[%c0_4, %c0_5] : memref<8x1xf32, #tpu.memory_space<vmem>>, vector<8x1xf32>
    tpu.vector_store %arg10[%c0_4, %c0_5], %7 {strides = array<i32>} : memref<8x1xf32, #tpu.memory_space<vmem>>, vector<8x1xf32>,
    %c1_i32 = arith.constant 1 : i32
    %9 = arith.cmpi eq, %arg1, %c1_i32 : i32
    %10 = arith.extui %9 : i1 to i32
    %c0_i32_6 = arith.constant 0 : i32
    %11 = arith.cmpi ne, %10, %c0_i32_6 : i32
    scf.if %11 {
      %c0_7 = arith.constant 0 : index
      %c0_8 = arith.constant 0 : index
      %12 = vector.load %arg10[%c0_7, %c0_8] : memref<8x1xf32, #tpu.memory_space<vmem>>, vector<8x1xf32>
      %c0_9 = arith.constant 0 : index
      %c0_10 = arith.constant 0 : index
      %13 = vector.load %arg8[%c0_9, %c0_10] : memref<8x4xf32, #tpu.memory_space<vmem>>, vector<8x4xf32>
      %14 = vector.broadcast %12 : vector<8x1xf32> to vector<8x4xf32>
      %15 = arith.mulf %14, %13 : vector<8x4xf32>
      %c0_11 = arith.constant 0 : index
      %c0_12 = arith.constant 0 : index
      %16 = vector.load %arg7[%c0_11, %c0_12] : memref<2x8xf32, #tpu.memory_space<vmem>>, vector<2x8xf32>
      %cst_13 = arith.constant dense<0.000000e+00> : vector<2x4xf32>
      %17 = tpu.matmul %16, %15, %cst_13 {dimension_numbers = #tpu.dot_dimension_numbers<[1], [0], [0], [1], [0, 0, 1, 1], [], []>} : vector<2x8xf32>, vector<8x4xf32>, vector<2x4xf32> -> vector<2x4xf32>
      %cst_14 = arith.constant 0.00111111114 : f32
      %18 = vector.broadcast %cst_14 : f32 to vector<2x4xf32>
      %19 = arith.mulf %17, %18 : vector<2x4xf32>
      %c0_15 = arith.constant 0 : index
      %c0_16 = arith.constant 0 : index
      %20 = vector.load %arg3[%c0_15, %c0_16] : memref<4x32xf32, #tpu.memory_space<vmem>>, vector<4x32xf32>
      %cst_17 = arith.constant dense<0.000000e+00> : vector<2x32xf32>
      %21 = tpu.matmul %19, %20, %cst_17 {dimension_numbers = #tpu.dot_dimension_numbers<[1], [0], [0], [1], [0, 0, 1, 1], [], []>} : vector<2x4xf32>, vector<4x32xf32>, vector<2x32xf32> -> vector<2x32xf32>
      %c0_18 = arith.constant 0 : index
      %c0_19 = arith.constant 0 : index
      %22 = vector.load %arg4[%c0_18, %c0_19] : memref<1x32xf32, #tpu.memory_space<vmem>>, vector<1x32xf32>
      %23 = vector.broadcast %22 : vector<1x32xf32> to vector<2x32xf32>
      %24 = arith.addf %21, %23 : vector<2x32xf32>
      %cst_20 = arith.constant 0.000000e+00 : f32
      %25 = vector.broadcast %cst_20 : f32 to vector<2x32xf32>
      %26 = arith.cmpf oge, %24, %25 : vector<2x32xf32>
      %cst_21 = arith.constant 1.000000e-01 : f32
      %27 = vector.broadcast %cst_21 : f32 to vector<2x32xf32>
      %28 = arith.mulf %27, %24 : vector<2x32xf32>
      %29 = arith.select %26, %24, %28 : vector<2x32xi1>, vector<2x32xf32>
      %c0_22 = arith.constant 0 : index
      %c0_23 = arith.constant 0 : index
      %30 = vector.load %arg5[%c0_22, %c0_23] : memref<32x8xf32, #tpu.memory_space<vmem>>, vector<32x8xf32>
      %cst_24 = arith.constant dense<0.000000e+00> : vector<2x8xf32>
      %31 = tpu.matmul %29, %30, %cst_24 {dimension_numbers = #tpu.dot_dimension_numbers<[1], [0], [0], [1], [0, 0, 1, 1], [], []>} : vector<2x32xf32>, vector<32x8xf32>, vector<2x8xf32> -> vector<2x8xf32>
      %c0_25 = arith.constant 0 : index
      %c0_26 = arith.constant 0 : index
      %32 = vector.load %arg6[%c0_25, %c0_26] : memref<1x8xf32, #tpu.memory_space<vmem>>, vector<1x8xf32>
      %33 = vector.broadcast %32 : vector<1x8xf32> to vector<2x8xf32>
      %34 = arith.addf %31, %33 : vector<2x8xf32>
      %cst_27 = arith.constant dense<0xFF800000> : vector<2xf32>
      %35 = vector.multi_reduction <maximumf>, %34, %cst_27 [1] : vector<2x8xf32> to vector<2xf32>
      %36 = vector.shape_cast %35 : vector<2xf32> to vector<2x1xf32>
      %37 = vector.broadcast %36 : vector<2x1xf32> to vector<2x8xf32>
      %38 = arith.subf %34, %37 : vector<2x8xf32>
      %39 = math.exp %38 : vector<2x8xf32>
      %cst_28 = arith.constant dense<0.000000e+00> : vector<2xf32>
      %40 = vector.multi_reduction <add>, %39, %cst_28 [1] : vector<2x8xf32> to vector<2xf32>
      %41 = vector.shape_cast %40 : vector<2xf32> to vector<2x1xf32>
      %42 = vector.broadcast %41 : vector<2x1xf32> to vector<2x8xf32>
      %43 = arith.divf %39, %42 : vector<2x8xf32>
      %c0_29 = arith.constant 0 : index
      %c0_30 = arith.constant 0 : index
      %44 = vector.load %arg9[%c0_29, %c0_30] : memref<2x8xf32, #tpu.memory_space<vmem>>, vector<2x8xf32>
      tpu.vector_store %arg9[%c0_29, %c0_30], %43 {strides = array<i32>} : memref<2x8xf32, #tpu.memory_space<vmem>>, vector<2x8xf32>,
    } else {
    }
    return
  }
  func.func @transform_0(%arg0: i32, %arg1: i32) -> (i32, i32) {
    %c0_i32 = arith.constant 0 : i32
    return %arg0, %arg1 : i32, i32
  }
  func.func @transform_1(%arg0: i32, %arg1: i32) -> (i32, i32) {
    %c0_i32 = arith.constant 0 : i32
    %c0_i32_0 = arith.constant 0 : i32
    %c0_i32_1 = arith.constant 0 : i32
    return %c0_i32, %c0_i32_0 : i32, i32
  }
  func.func @transform_2(%arg0: i32, %arg1: i32) -> (i32, i32) {
    %c0_i32 = arith.constant 0 : i32
    %c0_i32_0 = arith.constant 0 : i32
    %c0_i32_1 = arith.constant 0 : i32
    return %c0_i32, %c0_i32_0 : i32, i32
  }
  func.func @transform_3(%arg0: i32, %arg1: i32) -> (i32, i32) {
    %c0_i32 = arith.constant 0 : i32
    %c0_i32_0 = arith.constant 0 : i32
    %c0_i32_1 = arith.constant 0 : i32
    return %c0_i32, %c0_i32_0 : i32, i32
  }
  func.func @transform_4(%arg0: i32, %arg1: i32) -> (i32, i32) {
    %c0_i32 = arith.constant 0 : i32
    %c0_i32_0 = arith.constant 0 : i32
    %c0_i32_1 = arith.constant 0 : i32
    return %c0_i32, %c0_i32_0 : i32, i32
  }
  func.func @transform_5(%arg0: i32, %arg1: i32) -> (i32, i32) {
    %c0_i32 = arith.constant 0 : i32
    %c0_i32_0 = arith.constant 0 : i32
    %c0_i32_1 = arith.constant 0 : i32
    return %c0_i32, %c0_i32_0 : i32, i32
  }
  func.func @transform_6(%arg0: i32, %arg1: i32) -> (i32, i32) {
    %c0_i32 = arith.constant 0 : i32
    %c0_i32_0 = arith.constant 0 : i32
    %c0_i32_1 = arith.constant 0 : i32
    return %c0_i32, %c0_i32_0 : i32, i32
  }
  func.func @transform_7(%arg0: i32, %arg1: i32) -> (i32, i32) {
    %c0_i32 = arith.constant 0 : i32
    %c0_i32_0 = arith.constant 0 : i32
    return %arg0, %c0_i32 : i32, i32
  }
}

</mosaic_0001>

<bundles_post_ra>
// kernel: tpu_custom_call.1
= control target key start
LH: loop header
LB: loop body
LE: loop exit
PB: predicated region body
PF: predicated region fallthrough
CT: control target
= control target key end

     0   :  { %12 = vsyncpa [#allocation4], 0  ;;  %s1142_s0 = inlined_call_operand.hbm [shape: f32[8,1024], index: 0, kind: input, shape index: {}]   ;;  %s1143_s1 = inlined_call_operand.vmem [shape: f32[4,32], index: 1, kind: input, shape index: {}]   ;;  %s1144_s2 = inlined_call_operand.vmem [shape: f32[1,32], index: 2, kind: input, shape index: {}]   ;;  %s1145_s3 = inlined_call_operand.vmem [shape: f32[32,8], index: 3, kind: input, shape index: {}]   ;;  %s1146_s4 = inlined_call_operand.vmem [shape: f32[1,8], index: 4, kind: input, shape index: {}]   ;;  %s1147_s5 = inlined_call_operand.vmem [shape: f32[2,8], index: 5, kind: input, shape index: {}]   ;;  %s1148_s6 = inlined_call_operand.vmem [shape: f32[8,4], index: 6, kind: input, shape index: {}]   ;;  %s1149_s7 = inlined_call_operand.hbm [shape: f32[2,8], index: 7, kind: output, shape index: {}]  }
   0x1   :  { %14 = vsyncpa [#allocation4 + $0x1], 0 }
   0x2   :  { %15 = vsyncpa [#allocation5], 0  ;;  %s960_s24 = smov 0   ;;  %s962_s25 = smov 0  }
   0x3   :  { %s964_s26 = smov 0   ;;  %s966_s27 = smov 0  }
   0x4   :  { %s968_s28 = smov 0   ;;  %s970_s29 = smov 0  }
   0x5 LB: > { %s672_s30 = sadd.s32 4294967295, %s911_s29   ;;  %s30_s8 = sadd.s32 1, %s907_s28  ;;  %s911_s29 = sphi %s970_s29, %s21_s29   ;;  %s907_s28 = sphi %s968_s28, %s1160_s28   ;;  %s903_s27 = sphi %s966_s27, %s1159_s27   ;;  %s899_s26 = sphi %s964_s26, %s1158_s26   ;;  %s895_s25 = sphi %s962_s25, %s1157_s25   ;;  %s891_s24 = sphi %s960_s24, %s1156_s24  }
   0x6   : > { %p31_p0 = scmp.ge.s32.totalorder %s30_s8, 2  ;;  %s42_s9 = sadd.s32 1, %s899_s26 }
   0x7   : > { %p49_p1 = scmp.ne.s32.totalorder %s899_s26, %s895_s25  ;;  %p50_p2 = scmp.eq.s32.totalorder %s911_s29, 0 }
   0x8   : > { %s1162_s8 = smov (%p31_p0, %s30_s8), 0  ;;  %p55_p4 = scmp.ne.s32.totalorder %s895_s25, %s891_s24 }
   0x9   : > { %p996_p3 = por %p50_p2, %p49_p1  ;;  %s38_s11 = ssub.s32 %s907_s28, %s1162_s8 }
   0xa   : > { %p56_p5 = scmp.eq.s32.totalorder %s672_s30, 0  ;;  %p40_p6 = scmp.eq.s32.totalorder %s38_s11, 0 }
   0xb   : > { %p739_p8 = scmp.lt.s32.totalorder %s911_s29, 2  ;;  %s249_s14 = sand.u32 1, %s899_s26  }
   0xc   : > { %p1005_p7 = por %p56_p5, %p55_p4  ;;  %s692_s15 = sshll.u32 %s907_s28, 9 }
   0xd   : > { %s1011_s13 = scalar_select %p40_p6, %s899_s26, %s42_s9  }
   0xe   : > { %s675_s16 = sshll.u32 %s249_s14, 5  ;;  %s1018_s19 = scalar_lea.hbm %s1142_s0, %s692_s15 }
   0xf   : > { %s253_s20 = scalar_lea.vmem [#allocation3], %s675_s16  ;;  %p1022_p9 = pnand %p739_p8, %p996_p3 }
  0x10   : > { %s263_s21 = sshll.u32 %s253_s20, 4  ;;  %s250_s23 = scalar_lea.sflag [#allocation4], %s249_s14  ;;  %s1026_s21 = int_to_ptr.vmem [resolvable:$true] %s263_s21 }
  0x11   : > { %s801_s24 = scalar_lea.hbm %s1018_s19, 512  ;;  %p803_p13 = pneg %p1022_p9 }
  0x12   : > { %p802_p12 = scmp.ne.s32.totalorder %s1018_s19, %s801_s24  ;;  %s806_s11 = scalar_lea.hbm %s1142_s0, 1024 }
  0x13   : > { %p807_p2 = scmp.lt.u32.totalorder %s1018_s19, %s1142_s0  ;;  %p808_p3 = scmp.lt.u32.totalorder %s806_s11, %s801_s24 }
  0x14   : > { %p804_p0 = pnand %p803_p13, %p802_p12  ;;  %p810_p5 = scmp.lt.u32.totalorder %s801_s24, %s1018_s19 }
  0x15   : > { %p809_p4 = por %p808_p3, %p807_p2 }
  0x16   : > { %p805_p1 = pneg %p804_p0 }
  0x17   : > { %p811_p6 = por %p810_p5, %p809_p4 }
  0x19   : > { %p812_p8 = pnand %p811_p6, %p805_p1 }
  0x1b   : > { %815 = shalt.err (!%p812_p8)
}
  0x1c   : > { %s816_s14 = scalar_lea.vmem %s1026_s21, 512  ;;  %s913_s17 = smov [#allocation3]  }
  0x1d   : > { %p817_p12 = scmp.ne.s32.totalorder %s1026_s21, %s816_s14  ;;  %s821_s18 = sshll.u32 %s913_s17, 4  ;;  %s822_s18 = int_to_ptr.vmem [resolvable:$false] %s821_s18 }
  0x1e   : > { %s823_s20 = scalar_lea.vmem %s822_s18, 1024  ;;  %p824_p11 = scmp.lt.s32.totalorder %s1026_s21, %s822_s18 }
  0x1f   : > { %p819_p0 = pnand %p817_p12, %p803_p13  ;;  %p825_p2 = scmp.lt.s32.totalorder %s823_s20, %s816_s14 }
  0x21   : > { %p820_p10 = pneg %p819_p0  ;;  %p826_p3 = por %p825_p2, %p824_p11 }
  0x23   : > { %p827_p4 = pnand %p826_p3, %p820_p10 }
  0x25   : > { %830 = shalt.err (!%p827_p4)
}
  0x26   : > { %738 = dma.hbm_to_vmem [thread:$0]  (!%p1022_p9), %s1018_s19, 512, %s1026_s21, %s250_s23  }
  0x27   : > { %p1153_p1 = scmp.lt.s32.totalorder %s911_s29, 3  ;;  %p1154_p5 = scmp.ge.s32.totalorder %s911_s29, 1 }
  0x29   : > { %p269_p13 = pnand %p1154_p5, %p1153_p1 }
  0x2a   : > { %s274_s24 = sand.u32 (!%p269_p13), 1, %s895_s25  }
  0x2b   : > { %272 = sbr.rel (%p269_p13) target bundleno = 1335 (0x537), region = 48  ;;  %s679_s9 = sshll.u32 (!%p269_p13), %s274_s24, 5 }
  0x2c   : > { %s275_s10 = scalar_lea.sflag (!%p269_p13), [#allocation4], %s274_s24  ;;  %s278_s11 = scalar_lea.vmem (!%p269_p13), [#allocation3], %s679_s9 }
  0x32   : > { %882 = dma.done.wait (%p1005_p7), %s275_s10, 512  }
  0x33   : > { %884 = vsyncadd (%p1005_p7), %s275_s10, 4294966784  ;;  %p680_p10 = scmp.ne.s32.totalorder %s903_s27, 0 }
  0x34   : > { %vm309_vm0 = vcmask (!%p680_p10), 7168   ;;  %v914_v0 = vmov (!%p680_p10), 0.0  }
  0x35   : > { %308 = sbr.rel (%p680_p10) target bundleno = 60 (0x3c), region = 56  ;;  %310 = vst.msk [vmem:[#allocation2] sm:$0xff] (!%p680_p10), %vm309_vm0, %v914_v0 }
  0x3c PF: > { %v311_v1 = vld [vmem:[%s278_s11] sm:$0xff]  ;;  %v312_v2 = vld [vmem:[%s278_s11 + $0x8] sm:$0xff]  ;;  %v313_v3 = vld [vmem:[%s278_s11 + $0x10] sm:$0xff]  ;;  %vm322_vm1 = vcmask 7168   ;;  %p681_p7 = scmp.ne.s32.totalorder %s903_s27, 1 }
  0x3d   : > { %v316_v4 = vadd.f32 %v312_v2, %v311_v1  ;;  %v314_v5 = vld [vmem:[%s278_s11 + $0x18] sm:$0xff]  ;;  %v915_v12 = vmov (!%p681_p7), 0   ;;  %v916_v13 = vmov (!%p681_p7), 0.0   ;;  %vm917_vm2 = vmmov (!%p681_p7), 0   ;;  %v502_v20 = vld [vmem:[%s1145_s3 + $0x8] sm:$0xff] (!%p681_p7)  ;;  %v503_v26 = vld [vmem:[%s1145_s3 + $0x10] sm:$0xff] (!%p681_p7) }
  0x3e   : > { %v315_v8 = vld [vmem:[#allocation2] sm:$0xff]  ;;  %796 = vset.pattern.permute.xlu0 (!%p681_p7), %v915_v12  ;;  %702 = vmatprep.subr.mxu1 (!%p681_p7), %v916_v13  ;;  %vm337_vm3 = vcmask (!%p681_p7), 64512   ;;  %vm424_vm4 = vcmask (!%p681_p7), 1043456   ;;  %v918_v21 = vmov (!%p681_p7), 0.0|0.0   ;;  %vm420_vm5 = vcmask (!%p681_p7), 31744   ;;  %v504_v27 = vld [vmem:[%s1145_s3 + $0x18] sm:$0xff] (!%p681_p7) }
  0x3f   : > { %v317_v6 = vadd.f32 %v316_v4, %v313_v3  ;;  %704 = vmatprep.mubr.msk.f32.mxu1 (!%p681_p7), %vm917_vm2, %v916_v13  ;;  %720 = vmatprep.mubr.msk.f32.mxu0 (!%p681_p7), %vm917_vm2, %v916_v13  ;;  %v329_v14 = vld [vmem:[%s1148_s6] sm:$0xff] (!%p681_p7)  ;;  %v727_v28 = vpack.c.bf16 (!%p681_p7), %v504_v27, %v503_v26  ;;  %vm512_vm7 = vcmask (!%p681_p7), 261120   ;;  %vm586_vm8 = vcmask (!%p681_p7), 58368  }
  0x40   : > { %v336_v17 = vld [vmem:[%s1147_s5] sm:$0x3] (!%p681_p7)  ;;  %723 = vmatprep.subr.bf16.mxu0 (!%p681_p7), %v918_v21 }
  0x41   : > { %v318_v7 = vadd.f32 %v317_v6, %v314_v5  ;;  %v412_v18 = vld [vmem:[%s1143_s1] sm:$0xf] (!%p681_p7) }
  0x42   : > { %v501_v19 = vld [vmem:[%s1145_s3] sm:$0xff] (!%p681_p7) }
  0x43   : > { %319 = vadd.xlane.f32.xlu0 %v318_v7  ;;  %v724_v22 = vpack.c.bf16 (!%p681_p7), %v502_v20, %v501_v19  ;;  %v683_v29 = vld [vmem:[%s1144_s2] ss:$0 sm:$0xff] (!%p681_p7) }
  0x44   : > { %v686_v35 = vld [vmem:[%s1146_s4] ss:$0 sm:$0xff] (!%p681_p7) }
  0x45   : > { %725 = vmatpush3.bf16.msra.mxu0 (!%p681_p7), %v724_v22 }
  0x46   : > { %726 = vmatprep.subr.bf16.mxu0 (!%p681_p7), %v918_v21 }
  0x49   : > { %728 = vmatpush3.bf16.msra.mxu0 (!%p681_p7), %v727_v28 }
  0xcd   : > { %327 = sbr.rel (%p681_p7) target bundleno = 1310 (0x51e), region = 60 }
  0xd0   : > { %v320_v9 = vpop.xlane.xlu0 %319 }
  0xd1   : > { %v321_v10 = vadd.f32 %v320_v9, %v315_v8 }
  0xd3   : > { %323 = vst.msk [vmem:[#allocation2] sm:$0xff] %vm322_vm1, %v321_v10 }
  0xda   : > { %v328_v11 = vld [vmem:[#allocation2] sm:$0xff] }
  0xdb   : > { %332 = vperm.xlu0 %796, %v328_v11  }
 0x15a   : > { %v333_v15 = vpop.permute.xlu0 %332 }
 0x15b   : > { %v335_v16 = vmul.f32 %v333_v15, %v329_v14 }
 0x15d   : > { %703 = vmatpush3.msra.mxu1 %v335_v16 }
 0x15e   : > { %705 = vmatmul.mubr.msk.f32.vlgmr.msra.gmra.mrb[0].mxu1 %vm337_vm3, %v336_v17  ;;  %707 = vmatprep.subr.mxu1 %v916_v13 }
 0x15f   : > { %708 = vmatpush3.msk.msra.mxu1 %vm424_vm4, %v412_v18  ;;  %709 = vmatprep.mubr.msk.f32.mxu1 %vm917_vm2, %v916_v13 }
 0x231   : > { %v407_v23 = vpop.f32.mrb[0].mxu1 }
 0x232   : > { %v411_v24 = vmul.f32 0.0011111111, %v407_v23  ;;  %v706_v25 = vpop.f32.mrb[1].mxu1 }
 0x234   : > { %710 = vmatmul.mubr.msk.f32.vlgmr.msra.gmra.mrb[2].mxu1 %vm420_vm5, %v411_v24 }
 0x307   : > { %v494_v30 = vpop.f32.mrb[2].mxu1 }
 0x308   : > { %v495_v31 = vadd.f32 %v683_v29, %v494_v30  ;;  %v711_v32 = vpop.f32.mrb[3].mxu1 }
 0x30a   : > { %vm498_vm6 = vcmp.ge.f32.partialorder %v495_v31, 0.0  ;;  %v499_v33 = vmul.f32 0.1, %v495_v31 }
 0x30c   : > { %v500_v34 = vsel %vm498_vm6, %v495_v31, %v499_v33 }
 0x30d   : > { %721 = vmatmul.mubr.msk.f32.vlgmr.msra.gmra.mrb[0].mxu0 %vm512_vm7, %v500_v34 }
 0x3e0   : > { %v582_v36 = vpop.f32.mrb[0].mxu0 }
 0x3e1   : > { %v583_v37 = vadd.f32 %v686_v35, %v582_v36  ;;  %v722_v38 = vpop.f32.mrb[1].mxu0 }
 0x3e3   : > { %v587_v39 = vsel %vm586_vm8, %v583_v37, -inf }
 0x3e4   : > { %588 = vmax.xlane.f32.xlu0 %v587_v39 }
 0x471   : > { %v589_v40 = vpop.xlane.xlu0 %588 }
 0x472   : > { %v590_v41 = vsub.f32 %v583_v37, %v589_v40 }
 0x474   : > { %v591_v42 = vmul.f32 1.442695, %v590_v41 }
 0x476   : > { %797 = vpow2.f32 %v591_v42 }
 0x480   : > { %v798_v43 = vpop.eup %797 }
 0x481   : > { %v593_v44 = vsel %vm586_vm8, %v798_v43, 0.0 }
 0x482   : > { %594 = vadd.xlane.f32.xlu1 %v593_v44 }
 0x50f   : > { %v595_v45 = vpop.xlane.xlu1 %594 }
 0x510   : > { %799 = vrcp.f32 %v595_v45 }
 0x51a   : > { %v800_v46 = vpop.eup %799 }
 0x51b   : > { %v597_v47 = vmul.f32 %v800_v46, %v798_v43 }
 0x51d   : > { %598 = vst.msk [vmem:[#allocation6] sm:$0x3] %vm586_vm8, %v597_v47 }
 0x51e PF: > { %p1098_p9 = scmp.eq.s32.totalorder %s672_s30, 1  ;;  %s919_s22 = smov [#allocation6]  }
 0x51f   : > { %s608_s27 = sshll.u32 %s919_s22, 4  ;;  %s609_s27 = int_to_ptr.vmem [resolvable:$true] %s608_s27 }
 0x520   : > { %s831_s23 = scalar_lea.vmem %s609_s27, 32  ;;  %p838_p12 = scmp.lt.s32.totalorder %s609_s27, %s609_s27 }
 0x521   : > { %p832_p11 = scmp.ne.s32.totalorder %s609_s27, %s831_s23  ;;  %p839_p0 = scmp.lt.s32.totalorder %s831_s23, %s831_s23 }
 0x523   : > { %p833_p6 = pnand %p832_p11, %p1098_p9  ;;  %p840_p2 = por %p839_p0, %p838_p12 }
 0x525   : > { %p834_p8 = pneg %p833_p6 }
 0x527   : > { %p841_p3 = pnand %p840_p2, %p834_p8 }
 0x529   : > { %844 = shalt.err (!%p841_p3)
}
 0x52a   : > { %s845_s30 = scalar_lea.hbm %s1149_s7, 32 }
 0x52b   : > { %p846_p4 = scmp.ne.s32.totalorder %s1149_s7, %s845_s30  ;;  %p851_p13 = scmp.lt.u32.totalorder %s845_s30, %s1149_s7 }
 0x52d   : > { %p847_p1 = pnand %p846_p4, %p1098_p9 }
 0x52f   : > { %p848_p5 = pneg %p847_p1 }
 0x531   : > { %p853_p10 = pnand %p851_p13, %p848_p5 }
 0x533   : > { %856 = shalt.err (!%p853_p10)
}
 0x534   : > { %732 = dma.vmem_to_hbm [thread:$0]  (%p1098_p9), %s609_s27, 32, %s1149_s7, [#allocation5]  }
 0x535   : > { %886 = dma.done.wait (%p1098_p9), [#allocation5], 32  }
 0x536   : > { %888 = vsyncadd (%p1098_p9), [#allocation5], 4294967264 }
 0x537 PF: > { %s21_s29 = sadd.s32 1, %s911_s29   ;;  %s1156_s24 = smov %s895_s25 }
 0x538   : > { %p18_p7 = scmp.ge.s32.totalorder %s21_s29, 4   ;;  %s1157_s25 = smov %s899_s26 }
 0x539   : > { %s1158_s26 = smov %s1011_s13  ;;  %s1159_s27 = smov %s907_s28 }
 0x53a   : > { %s1160_s28 = smov %s1162_s8  ;;  %20 = sbr.rel (!%p18_p7) target bundleno = 5 (0x5), region = 94 }
 0x541   :  { %621 = vsyncpa [#allocation4], 1 }
 0x542   :  { %623 = vsyncpa [#allocation4 + $0x1], 1 }
 0x543   :  { %624 = vsyncpa [#allocation5], 1 }
 0x544   :  { %626 = vsyncpa [#allocation5 + $0x1], 1 }

</bundles_post_ra>
